<compile_context>
chip_gen: v5e
topology: v5e:2x2
jax: 0.10.0
libtpu: 0.0.40
codegen_flags: <defaults>
</compile_context>

<pallas_src>
import numpy as np
import jax
import jax.numpy as jnp
from jax.experimental import pallas as pl
from jax.experimental.pallas import tpu as pltpu

_LANES = 128                          # TPU vreg lane width
_BYTE_BUDGET = 2 * 1024 * 1024        # ~2 MiB per block: safe on v5e, near-roofline on v6e/v7x
_SINGLE_BLOCK_MAX_BYTES = 256 * 1024  # <=256 KiB: one gridless block is fine
_MIN_GRID_STEPS = 4                   # keep >=4 steps so both v7x TCs get work


# --------------------------------------------------------------------------
# Zero-copy path: HBM-resident refs + output aliasing, ~0 bytes moved.
# --------------------------------------------------------------------------
def _pin_kernel(x_ref, o_ref, stage_ref, sem_ref):
    # x_ref / o_ref are raw HBM refs (memory_space=pl.ANY). With
    # input_output_aliases={0: 0} the output buffer already holds x's data at
    # kernel entry, so we only move ONE element through VMEM to create a real
    # read-of-input / write-of-output dependency.
    idx = tuple(pl.ds(0, 1) for _ in x_ref.shape)
    cp_in = pltpu.make_async_copy(x_ref.at[idx], stage_ref, sem_ref)
    cp_in.start()
    cp_in.wait()
    cp_out = pltpu.make_async_copy(stage_ref, o_ref.at[idx], sem_ref)
    cp_out.start()
    cp_out.wait()


def _identity_zero_copy(x: jnp.ndarray) -> jnp.ndarray:
    squeeze_back = False
    if x.ndim == 0:
        x = x.reshape(1)
        squeeze_back = True

    y = pl.pallas_call(
        _pin_kernel,
        out_shape=jax.ShapeDtypeStruct(x.shape, x.dtype),
        in_specs=[pl.BlockSpec(memory_space=pl.ANY)],
        out_specs=pl.BlockSpec(memory_space=pl.ANY),
        scratch_shapes=[
            pltpu.VMEM((1,) * x.ndim, x.dtype),
            pltpu.SemaphoreType.DMA(()),
        ],
        input_output_aliases={0: 0},
        compiler_params=pltpu.CompilerParams(has_side_effects=True),
    )(x)

    if squeeze_back:
        y = y.reshape(())
    return y


# --------------------------------------------------------------------------
# Fallback path: lane-dense streaming copy (only if zero-copy fails to lower).
# --------------------------------------------------------------------------
def _copy_kernel(x_ref, o_ref):
    o_ref[...] = x_ref[...]


def _round_up(v: int, m: int) -> int:
    return ((v + m - 1) // m) * m


def _identity_tiled_copy(x: jnp.ndarray) -> jnp.ndarray:
    orig_shape = x.shape
    n = x.size
    if n == 0:
        return x
    itemsize = x.dtype.itemsize

    if n % _LANES == 0:
        rows = n // _LANES
        x2d = x.reshape(rows, _LANES)
        row_bytes = _LANES * itemsize

        if rows * row_bytes <= _SINGLE_BLOCK_MAX_BYTES:
            # Small input: a single gridless block, zero per-step overhead.
            y2d = pl.pallas_call(
                _copy_kernel,
                out_shape=jax.ShapeDtypeStruct((rows, _LANES), x.dtype),
            )(x2d)
        else:
            # dtype-aware tile targeting ~_BYTE_BUDGET bytes per block, but
            # shrink it so the grid has >= _MIN_GRID_STEPS steps (v7x dual TC).
            budget_rows = max(8, (_BYTE_BUDGET // row_bytes) // 8 * 8)
            steps_rows = _round_up(pl.cdiv(rows, _MIN_GRID_STEPS), 8)
            row_tile = max(8, min(budget_rows, steps_rows))
            spec = pl.BlockSpec((row_tile, _LANES), lambda i: (i, 0))
            y2d = pl.pallas_call(
                _copy_kernel,
                out_shape=jax.ShapeDtypeStruct((rows, _LANES), x.dtype),
                grid=(pl.cdiv(rows, row_tile),),
                in_specs=[spec],
                out_specs=spec,
                compiler_params=pltpu.CompilerParams(
                    dimension_semantics=("parallel",),
                ),
            )(x2d)
        return y2d.reshape(orig_shape)

    # Size not divisible by 128: 1-D lane-aligned chunks (last block masked by
    # Pallas) instead of a whole-array VMEM block that could exceed scoped VMEM.
    xf = x.reshape(n)
    if n * itemsize <= _SINGLE_BLOCK_MAX_BYTES:
        yf = pl.pallas_call(
            _copy_kernel,
            out_shape=jax.ShapeDtypeStruct((n,), x.dtype),
        )(xf)
    else:
        chunk = max(_LANES, (_BYTE_BUDGET // itemsize) // _LANES * _LANES)
        spec = pl.BlockSpec((chunk,), lambda i: (i,))
        yf = pl.pallas_call(
            _copy_kernel,
            out_shape=jax.ShapeDtypeStruct((n,), x.dtype),
            grid=(pl.cdiv(n, chunk),),
            in_specs=[spec],
            out_specs=spec,
            compiler_params=pltpu.CompilerParams(
                dimension_semantics=("parallel",),
            ),
        )(xf)
    return yf.reshape(orig_shape)


# --------------------------------------------------------------------------
# Public wrapper: IdentityEmbedding.forward
# --------------------------------------------------------------------------
def identity_embedding(x: jnp.ndarray) -> jnp.ndarray:
    """Pallas implementation of IdentityEmbedding.forward: returns x unchanged."""
    if x.size == 0:
        return x
    try:
        return _identity_zero_copy(x)
    except Exception:
        # Robustness guard: if the ANY-space/aliased variant cannot be lowered
        # on this backend, fall back to a roofline-quality streaming copy.
        return _identity_tiled_copy(x)


if __name__ == "__main__":
    key = jax.random.PRNGKey(0)
    # Small NCHW input consistent with a DDPM-style embedding input.
    x = jax.random.normal(key, (2, 4, 16, 16), dtype=jnp.float32)
    x_host = np.asarray(x)  # host snapshot for the correctness check

    # Primary (zero-copy) path.
    y = identity_embedding(x)
    jax.block_until_ready(y)
    assert y.shape == x_host.shape and y.dtype == x.dtype
    assert np.array_equal(np.asarray(y), x_host)

    # Also exercise the tiled-copy fallback, both gridless and gridded paths.
    y2 = _identity_tiled_copy(x)
    jax.block_until_ready(y2)
    assert np.array_equal(np.asarray(y2), x_host)

    key2 = jax.random.PRNGKey(0)
    xb = jax.random.normal(key2, (2, 4, 128, 128), dtype=jnp.float32)  # 512 KiB -> gridded path
    xb_host = np.asarray(xb)
    y3 = _identity_tiled_copy(xb)
    jax.block_until_ready(y3)
    assert np.array_equal(np.asarray(y3), xb_host)

    print("KERNEL_OK")
</pallas_src>

<mosaic_0001>
module attributes {stable_mosaic.version = 11 : i64} {
  func.func @_pin_kernel(%arg0: memref<2x4x16x16xf32, #tpu.memory_space<any>>, %arg1: memref<2x4x16x16xf32, #tpu.memory_space<any>>, %arg2: memref<1x1x1x1xf32, #tpu.memory_space<vmem>>, %arg3: memref<!tpu.dma_semaphore, #tpu.memory_space<semaphore_mem>>) attributes {dimension_semantics = [], scalar_prefetch = 0 : i64, scratch_operands = 2 : i64, tpu.core_type = #tpu.core_type<tc>} {
    %c0_i32 = arith.constant 0 : i32
    %c0_i32_0 = arith.constant 0 : i32
    %c0_i32_1 = arith.constant 0 : i32
    %c0_i32_2 = arith.constant 0 : i32
    %0 = tpu.memref_slice %arg0[%c0_i32, %c0_i32_0, %c0_i32_1, %c0_i32_2] : memref<2x4x16x16xf32, #tpu.memory_space<any>> -> memref<1x1x1x1xf32, #tpu.memory_space<any>>
    tpu.enqueue_dma source(%0 : memref<1x1x1x1xf32, #tpu.memory_space<any>>) target(%arg2 : memref<1x1x1x1xf32, #tpu.memory_space<vmem>>) target_semaphore(%arg3 : memref<!tpu.dma_semaphore, #tpu.memory_space<semaphore_mem>>)
    %c0_i32_3 = arith.constant 0 : i32
    %c0_i32_4 = arith.constant 0 : i32
    %c0_i32_5 = arith.constant 0 : i32
    %c0_i32_6 = arith.constant 0 : i32
    %1 = tpu.memref_slice %arg0[%c0_i32_3, %c0_i32_4, %c0_i32_5, %c0_i32_6] : memref<2x4x16x16xf32, #tpu.memory_space<any>> -> memref<1x1x1x1xf32, #tpu.memory_space<any>>
    tpu.wait_dma2 semaphore(%arg3 : memref<!tpu.dma_semaphore, #tpu.memory_space<semaphore_mem>>) src(%1 : memref<1x1x1x1xf32, #tpu.memory_space<any>>) dst(%arg2 : memref<1x1x1x1xf32, #tpu.memory_space<vmem>>)
    %c0_i32_7 = arith.constant 0 : i32
    %c0_i32_8 = arith.constant 0 : i32
    %c0_i32_9 = arith.constant 0 : i32
    %c0_i32_10 = arith.constant 0 : i32
    %2 = tpu.memref_slice %arg1[%c0_i32_7, %c0_i32_8, %c0_i32_9, %c0_i32_10] : memref<2x4x16x16xf32, #tpu.memory_space<any>> -> memref<1x1x1x1xf32, #tpu.memory_space<any>>
    tpu.enqueue_dma source(%arg2 : memref<1x1x1x1xf32, #tpu.memory_space<vmem>>) target(%2 : memref<1x1x1x1xf32, #tpu.memory_space<any>>) target_semaphore(%arg3 : memref<!tpu.dma_semaphore, #tpu.memory_space<semaphore_mem>>)
    %c0_i32_11 = arith.constant 0 : i32
    %c0_i32_12 = arith.constant 0 : i32
    %c0_i32_13 = arith.constant 0 : i32
    %c0_i32_14 = arith.constant 0 : i32
    %3 = tpu.memref_slice %arg1[%c0_i32_11, %c0_i32_12, %c0_i32_13, %c0_i32_14] : memref<2x4x16x16xf32, #tpu.memory_space<any>> -> memref<1x1x1x1xf32, #tpu.memory_space<any>>
    tpu.wait_dma2 semaphore(%arg3 : memref<!tpu.dma_semaphore, #tpu.memory_space<semaphore_mem>>) src(%arg2 : memref<1x1x1x1xf32, #tpu.memory_space<vmem>>) dst(%3 : memref<1x1x1x1xf32, #tpu.memory_space<any>>)
    return
  }
}

module attributes {stable_mosaic.version = 11 : i64} {
  func.func @_copy_kernel(%arg0: memref<16x128xf32, #tpu.memory_space<vmem>>, %arg1: memref<16x128xf32, #tpu.memory_space<vmem>>) attributes {dimension_semantics = [], scalar_prefetch = 0 : i64, scratch_operands = 0 : i64, tpu.core_type = #tpu.core_type<tc>} {
    %c0 = arith.constant 0 : index
    %c0_0 = arith.constant 0 : index
    %0 = vector.load %arg0[%c0, %c0_0] : memref<16x128xf32, #tpu.memory_space<vmem>>, vector<16x128xf32>
    %c0_1 = arith.constant 0 : index
    %c0_2 = arith.constant 0 : index
    %1 = vector.load %arg1[%c0_1, %c0_2] : memref<16x128xf32, #tpu.memory_space<vmem>>, vector<16x128xf32>
    tpu.vector_store %arg1[%c0_1, %c0_2], %0 {strides = array<i32>} : memref<16x128xf32, #tpu.memory_space<vmem>>, vector<16x128xf32>,
    return
  }
}

</mosaic_0001>

<bundles_post_ra>
// kernel: tpu_custom_call.1
= control target key start
LH: loop header
LB: loop body
LE: loop exit
PB: predicated region body
PF: predicated region fallthrough
CT: control target
= control target key end

     0   :  { %6 = vsyncpa [#allocation3], 0  ;;  %s124_s0 = inlined_call_operand.hbm [shape: f32[16,128], index: 0, kind: input, shape index: {}]   ;;  %s125_s1 = inlined_call_operand.hbm [shape: f32[16,128], index: 1, kind: output, shape index: {}]  }
   0x1   :  { %7 = vsyncpa [#allocation4], 0  ;;  %s12_s8 = sshll.u32 %s124_s0, 4  ;;  %s104_s9 = smov [#allocation2]   ;;  %s13_s8 = int_to_ptr.hbm [resolvable:$true] %s12_s8 }
   0x2   :  { %s14_s10 = sshll.u32 %s104_s9, 4  ;;  %s105_s11 = smov 128   ;;  %s15_s10 = int_to_ptr.vmem [resolvable:$true] %s14_s10 }
   0x3   :  { %s106_s12 = smov 8  }
   0x4   :  { %20 = dma.hbm_to_vmem [thread:$0]  %s13_s8, 256, %s15_s10, [#allocation3], %s105_s11, %s105_s11, %s106_s12  }
   0x5   :  { %100 = dma.done.wait [#allocation3], 256  }
   0x6   :  { %101 = vsyncadd [#allocation3], 4294967040  ;;  %s107_s13 = smov [#allocation5]   ;;  %s35_s17 = sshll.u32 %s125_s1, 4  ;;  %v25_v0 = vld [vmem:[#allocation2] sm:$0xff]  ;;  %v26_v1 = vld [vmem:[#allocation2 + $0x8] sm:$0xff]  ;;  %s36_s17 = int_to_ptr.hbm [resolvable:$true] %s35_s17 }
   0x7   :  { %s33_s14 = sshll.u32 %s107_s13, 4  ;;  %27 = vst [vmem:[#allocation5] sm:$0xff] %v25_v0  ;;  %s34_s14 = int_to_ptr.vmem [resolvable:$true] %s33_s14 }
   0x8   :  { %28 = vst [vmem:[#allocation5 + $0x8] sm:$0xff] %v26_v1 }
   0x9   :  { %41 = dma.vmem_to_hbm [thread:$0]  %s34_s14, 256, %s36_s17, [#allocation4], %s105_s11, %s105_s11, %s106_s12  }
   0xa   :  { %102 = dma.done.wait [#allocation4], 256  }
   0xb   :  { %103 = vsyncadd [#allocation4], 4294967040 }
   0xc   :  { %46 = vsyncpa [#allocation3], 1 }
   0xd   :  { %47 = vsyncpa [#allocation4], 1 }

</bundles_post_ra>
